<compile_context>
chip_gen: v6e
topology: v6e:2x2x1
jax: 0.10.0
libtpu: 0.0.40
codegen_flags: <defaults>
</compile_context>

<pallas_src>
import jax
import jax.numpy as jnp
from jax.experimental import pallas as pl
from jax.experimental.pallas import tpu as pltpu

IN_FEATURES = 28 * 28          # 784 (kept unpadded: block last dim == full array dim)
HIDDEN = 500
OUT_FEATURES = 10

HIDDEN_PAD = 512               # 4 * 128 lanes
OUT_PAD = 128                  # one full lane group (unmasked vst)
TB_MAX = 1024                  # max rows per grid step


def _cdiv(a, b):
    return -(-a // b)


def _round_up(x, m):
    return _cdiv(x, m) * m


def mlp_kernel(x_ref, w1_ref, b1_ref, w2_ref, b2_ref, o_ref):
    # x_ref : (TB, 784) f32        w1_ref: (784, 512) bf16
    # b1_ref: (1, 512)  f32        w2_ref: (512, 128) bf16
    # b2_ref: (1, 128)  f32        o_ref : (TB, 128)  bf16
    x = x_ref[...].astype(jnp.bfloat16)                   # cast in-kernel (VPU), no extra HBM pass
    h = jnp.dot(x, w1_ref[...], preferred_element_type=jnp.float32)
    h = jnp.maximum(h + b1_ref[...], 0.0)                 # bias + ReLU (VPU)
    y = jnp.dot(h.astype(jnp.bfloat16), w2_ref[...],
                preferred_element_type=jnp.float32)
    o_ref[...] = (y + b2_ref[...]).astype(o_ref.dtype)


def prepare_params(w1, b1, w2, b2):
    """One-time weight prep: lane-pad HIDDEN->512, OUT->128 and cast to bf16.

    Zero padding keeps the math exact: padded hidden units have zero weights and
    zero bias (ReLU(0)=0 contributes nothing), padded output columns are sliced
    off by the wrapper."""
    w1_p = jnp.pad(w1, ((0, 0), (0, HIDDEN_PAD - HIDDEN))).astype(jnp.bfloat16)
    b1_p = jnp.pad(b1.reshape(1, HIDDEN),
                   ((0, 0), (0, HIDDEN_PAD - HIDDEN))).astype(jnp.float32)
    w2_p = jnp.pad(w2, ((0, HIDDEN_PAD - HIDDEN), (0, OUT_PAD - OUT_FEATURES))).astype(jnp.bfloat16)
    b2_p = jnp.pad(b2.reshape(1, OUT_FEATURES),
                   ((0, 0), (0, OUT_PAD - OUT_FEATURES))).astype(jnp.float32)
    return w1_p, b1_p, w2_p, b2_p


def net_forward(x, w1_p, b1_p, w2_p, b2_p):
    """y = relu(x.view(-1, 784) @ W1 + b1) @ W2 + b2, with pre-padded params."""
    x2d = x.reshape(-1, IN_FEATURES)          # torch's x.view(-1, 784); free for contiguous x
    if x2d.dtype != jnp.float32:
        x2d = x2d.astype(jnp.float32)
    B = x2d.shape[0]

    # Tile selection:
    #  - snug TB (multiple of 8 sublanes) so batch padding waste is minimal,
    #  - capped at TB_MAX rows per step,
    #  - grid length kept even when there are enough rows so the "parallel"
    #    row axis shards across both TensorCores on v7x.
    n_tiles = _cdiv(B, TB_MAX)
    if B >= 16 and n_tiles % 2:
        n_tiles += 1
    TB = _round_up(_cdiv(B, n_tiles), 8)
    B_pad = TB * n_tiles

    if B_pad > B:
        x2d = jnp.pad(x2d, ((0, B_pad - B), (0, 0)))      # rows only, and only when needed

    flops = 2 * B_pad * IN_FEATURES * HIDDEN_PAD + 2 * B_pad * HIDDEN_PAD * OUT_PAD
    bytes_accessed = (B_pad * IN_FEATURES * 4             # x (f32, read once)
                      + w1_p.size * 2 + w2_p.size * 2     # bf16 weights (VMEM-resident)
                      + b1_p.size * 4 + b2_p.size * 4
                      + B_pad * OUT_PAD * 2)              # bf16 output writeback

    out = pl.pallas_call(
        mlp_kernel,
        out_shape=jax.ShapeDtypeStruct((B_pad, OUT_PAD), jnp.bfloat16),
        grid_spec=pltpu.PrefetchScalarGridSpec(
            num_scalar_prefetch=0,
            grid=(n_tiles,),
            in_specs=[
                pl.BlockSpec((TB, IN_FEATURES), lambda i: (i, 0)),         # x: walks batch
                pl.BlockSpec((IN_FEATURES, HIDDEN_PAD), lambda i: (0, 0)), # W1: resident
                pl.BlockSpec((1, HIDDEN_PAD), lambda i: (0, 0)),           # b1: resident
                pl.BlockSpec((HIDDEN_PAD, OUT_PAD), lambda i: (0, 0)),     # W2: resident
                pl.BlockSpec((1, OUT_PAD), lambda i: (0, 0)),              # b2: resident
            ],
            out_specs=pl.BlockSpec((TB, OUT_PAD), lambda i: (i, 0)),
        ),
        compiler_params=pltpu.CompilerParams(
            dimension_semantics=("parallel",),   # shard row tiles across v7x's 2 TCs
        ),
        cost_estimate=pl.CostEstimate(
            flops=flops, transcendentals=0, bytes_accessed=bytes_accessed),
    )(x2d, w1_p, b1_p, w2_p, b2_p)

    # Slice off padded rows / lanes; return f32 logits for torch-API parity.
    return out[:B, :OUT_FEATURES].astype(jnp.float32)


def init_params(key):
    # Deterministic init mimicking torch.nn.Linear's U(-1/sqrt(fan_in), 1/sqrt(fan_in)).
    k1, k2, k3, k4 = jax.random.split(key, 4)
    bound1 = 1.0 / (IN_FEATURES ** 0.5)
    bound2 = 1.0 / (HIDDEN ** 0.5)
    w1 = jax.random.uniform(k1, (IN_FEATURES, HIDDEN), jnp.float32, -bound1, bound1)
    b1 = jax.random.uniform(k2, (HIDDEN,), jnp.float32, -bound1, bound1)
    w2 = jax.random.uniform(k3, (HIDDEN, OUT_FEATURES), jnp.float32, -bound2, bound2)
    b2 = jax.random.uniform(k4, (OUT_FEATURES,), jnp.float32, -bound2, bound2)
    return w1, b1, w2, b2


def _ref(x, w1, b1, w2, b2):
    x2d = x.reshape(-1, IN_FEATURES).astype(jnp.float32)
    return jnp.maximum(x2d @ w1 + b1, 0.0) @ w2 + b2


if __name__ == "__main__":
    key = jax.random.PRNGKey(0)
    pkey, xkey, xkey2, xkey3 = jax.random.split(key, 4)
    w1, b1, w2, b2 = init_params(pkey)
    params = prepare_params(w1, b1, w2, b2)      # one-time pad + bf16 cast
    fwd = jax.jit(net_forward)

    # MNIST-like input: batch=2, 1x28x28 (NCHW); forward flattens to (2, 784).
    x_small = jax.random.normal(xkey, (2, 1, 28, 28), jnp.float32)
    out_small = jax.block_until_ready(fwd(x_small, *params))
    assert out_small.shape == (2, OUT_FEATURES)
    assert jnp.allclose(out_small, _ref(x_small, w1, b1, w2, b2),
                        atol=3e-2, rtol=3e-2), "mismatch vs reference (small batch)"

    # Larger batch: even grid (2 tiles of 256 rows), exercises megacore sharding.
    x_big = jax.random.normal(xkey2, (512, 1, 28, 28), jnp.float32)
    out_big = jax.block_until_ready(fwd(x_big, *params))
    assert out_big.shape == (512, OUT_FEATURES)
    assert jnp.allclose(out_big, _ref(x_big, w1, b1, w2, b2),
                        atol=3e-2, rtol=3e-2), "mismatch vs reference (tiled batch)"

    # Ragged batch: exercises snug-TB selection + minimal row padding (300 -> 304).
    x_odd = jax.random.normal(xkey3, (300, 1, 28, 28), jnp.float32)
    out_odd = jax.block_until_ready(fwd(x_odd, *params))
    assert out_odd.shape == (300, OUT_FEATURES)
    assert jnp.allclose(out_odd, _ref(x_odd, w1, b1, w2, b2),
                        atol=3e-2, rtol=3e-2), "mismatch vs reference (ragged batch)"

    print("KERNEL_OK")
</pallas_src>

<mosaic_0001>
module attributes {stable_mosaic.version = 11 : i64} {
  func.func @mlp_kernel(%arg0: i32, %arg1: memref<8x784xf32, #tpu.memory_space<vmem>>, %arg2: memref<784x512xbf16, #tpu.memory_space<vmem>>, %arg3: memref<1x512xf32, #tpu.memory_space<vmem>>, %arg4: memref<512x128xbf16, #tpu.memory_space<vmem>>, %arg5: memref<1x128xf32, #tpu.memory_space<vmem>>, %arg6: memref<8x128xbf16, #tpu.memory_space<vmem>>) attributes {dimension_semantics = [#tpu.dimension_semantics<parallel>], iteration_bounds = array<i64: 1>, scalar_prefetch = 0 : i64, scratch_operands = 0 : i64, tpu.core_type = #tpu.core_type<tc>, window_params = [{transform_indices = @transform_0, window_bounds = array<i64: 8, 784>}, {pipeline_mode = #tpu.pipeline_mode<synchronous>, transform_indices = @transform_1, window_bounds = array<i64: 784, 512>}, {pipeline_mode = #tpu.pipeline_mode<synchronous>, transform_indices = @transform_2, window_bounds = array<i64: 1, 512>}, {pipeline_mode = #tpu.pipeline_mode<synchronous>, transform_indices = @transform_3, window_bounds = array<i64: 512, 128>}, {pipeline_mode = #tpu.pipeline_mode<synchronous>, transform_indices = @transform_4, window_bounds = array<i64: 1, 128>}, {transform_indices = @transform_5, window_bounds = array<i64: 8, 128>}]} {
    %c0 = arith.constant 0 : index
    %c0_0 = arith.constant 0 : index
    %0 = vector.load %arg1[%c0, %c0_0] : memref<8x784xf32, #tpu.memory_space<vmem>>, vector<8x784xf32>
    %1 = arith.truncf %0 : vector<8x784xf32> to vector<8x784xbf16>
    %c0_1 = arith.constant 0 : index
    %c0_2 = arith.constant 0 : index
    %2 = vector.load %arg2[%c0_1, %c0_2] : memref<784x512xbf16, #tpu.memory_space<vmem>>, vector<784x512xbf16>
    %cst = arith.constant dense<0.000000e+00> : vector<8x512xf32>
    %3 = tpu.matmul %1, %2, %cst {dimension_numbers = #tpu.dot_dimension_numbers<[1], [0], [0], [1], [0, 0, 1, 1], [], []>} : vector<8x784xbf16>, vector<784x512xbf16>, vector<8x512xf32> -> vector<8x512xf32>
    %c0_3 = arith.constant 0 : index
    %c0_4 = arith.constant 0 : index
    %4 = vector.load %arg3[%c0_3, %c0_4] : memref<1x512xf32, #tpu.memory_space<vmem>>, vector<1x512xf32>
    %5 = vector.broadcast %4 : vector<1x512xf32> to vector<8x512xf32>
    %6 = arith.addf %3, %5 : vector<8x512xf32>
    %cst_5 = arith.constant 0.000000e+00 : f32
    %7 = vector.broadcast %cst_5 : f32 to vector<8x512xf32>
    %8 = arith.maximumf %6, %7 : vector<8x512xf32>
    %9 = arith.truncf %8 : vector<8x512xf32> to vector<8x512xbf16>
    %c0_6 = arith.constant 0 : index
    %c0_7 = arith.constant 0 : index
    %10 = vector.load %arg4[%c0_6, %c0_7] : memref<512x128xbf16, #tpu.memory_space<vmem>>, vector<512x128xbf16>
    %cst_8 = arith.constant dense<0.000000e+00> : vector<8x128xf32>
    %11 = tpu.matmul %9, %10, %cst_8 {dimension_numbers = #tpu.dot_dimension_numbers<[1], [0], [0], [1], [0, 0, 1, 1], [], []>} : vector<8x512xbf16>, vector<512x128xbf16>, vector<8x128xf32> -> vector<8x128xf32>
    %c0_9 = arith.constant 0 : index
    %c0_10 = arith.constant 0 : index
    %12 = vector.load %arg5[%c0_9, %c0_10] : memref<1x128xf32, #tpu.memory_space<vmem>>, vector<1x128xf32>
    %13 = vector.broadcast %12 : vector<1x128xf32> to vector<8x128xf32>
    %14 = arith.addf %11, %13 : vector<8x128xf32>
    %15 = arith.truncf %14 : vector<8x128xf32> to vector<8x128xbf16>
    %c0_11 = arith.constant 0 : index
    %c0_12 = arith.constant 0 : index
    %16 = vector.load %arg6[%c0_11, %c0_12] : memref<8x128xbf16, #tpu.memory_space<vmem>>, vector<8x128xbf16>
    tpu.vector_store %arg6[%c0_11, %c0_12], %15 {strides = array<i32>} : memref<8x128xbf16, #tpu.memory_space<vmem>>, vector<8x128xbf16>,
    return
  }
  func.func @transform_0(%arg0: i32) -> (i32, i32) {
    %c0_i32 = arith.constant 0 : i32
    %c0_i32_0 = arith.constant 0 : i32
    return %arg0, %c0_i32 : i32, i32
  }
  func.func @transform_1(%arg0: i32) -> (i32, i32) {
    %c0_i32 = arith.constant 0 : i32
    %c0_i32_0 = arith.constant 0 : i32
    %c0_i32_1 = arith.constant 0 : i32
    return %c0_i32, %c0_i32_0 : i32, i32
  }
  func.func @transform_2(%arg0: i32) -> (i32, i32) {
    %c0_i32 = arith.constant 0 : i32
    %c0_i32_0 = arith.constant 0 : i32
    %c0_i32_1 = arith.constant 0 : i32
    return %c0_i32, %c0_i32_0 : i32, i32
  }
  func.func @transform_3(%arg0: i32) -> (i32, i32) {
    %c0_i32 = arith.constant 0 : i32
    %c0_i32_0 = arith.constant 0 : i32
    %c0_i32_1 = arith.constant 0 : i32
    return %c0_i32, %c0_i32_0 : i32, i32
  }
  func.func @transform_4(%arg0: i32) -> (i32, i32) {
    %c0_i32 = arith.constant 0 : i32
    %c0_i32_0 = arith.constant 0 : i32
    %c0_i32_1 = arith.constant 0 : i32
    return %c0_i32, %c0_i32_0 : i32, i32
  }
  func.func @transform_5(%arg0: i32) -> (i32, i32) {
    %c0_i32 = arith.constant 0 : i32
    %c0_i32_0 = arith.constant 0 : i32
    return %arg0, %c0_i32 : i32, i32
  }
}

</mosaic_0001>

<bundles_post_ra>
// kernel: net_forward.1
= control target key start
LH: loop header
LB: loop body
LE: loop exit
PB: predicated region body
PF: predicated region fallthrough
CT: control target
= control target key end

     0   :  { %10 = vsyncpa [#allocation3], 0  ;;  %s2564_s18 = smov [#allocation2]   ;;  %s2759_s0 = inlined_call_operand.vmem [shape: f32[8,784], index: 0, kind: input, shape index: {}]   ;;  %s2760_s1 = inlined_call_operand.hbm [shape: bf16[784,512], index: 1, kind: input, shape index: {}]   ;;  %s2761_s2 = inlined_call_operand.vmem [shape: f32[1,512], index: 2, kind: input, shape index: {}]   ;;  %s2762_s3 = inlined_call_operand.vmem [shape: bf16[512,128], index: 3, kind: input, shape index: {}]   ;;  %s2763_s4 = inlined_call_operand.vmem [shape: f32[1,128], index: 4, kind: input, shape index: {}]   ;;  %s2764_s5 = inlined_call_operand.vmem [shape: bf16[8,128], index: 5, kind: output, shape index: {}]  }
   0x1   :  { %s18_s19 = sshll.u32 %s2564_s18, 4  ;;  %s19_s19 = int_to_ptr.vmem [resolvable:$true] %s18_s19 }
   0x2   :  { %s2550_s20 = scalar_lea.vmem %s19_s19, 25088  ;;  %p2555_p1 = scmp.lt.s32.totalorder %s19_s19, %s19_s19 }
   0x3   :  { %p2551_p0 = scmp.ne.s32.totalorder %s19_s19, %s2550_s20  ;;  %p2556_p2 = scmp.lt.s32.totalorder %s2550_s20, %s2550_s20 }
   0x5   :  { %p2557_p3 = por %p2556_p2, %p2555_p1 }
   0x7   :  { %p2558_p4 = pnand %p2557_p3, %p2551_p0 }
   0x9   :  { %2561 = shalt.err (!%p2558_p4)
}
   0xa   :  { %s2565_s21 = smov 256   ;;  %s2566_s22 = smov 16  }
   0xb   :  { %24 = dma.hbm_to_vmem [thread:$0]  %s2760_s1, 25088, %s19_s19, [#allocation3], %s2565_s21, %s2565_s21, %s2566_s22  }
   0xc   :  { %2562 = dma.done.wait [#allocation3], 25088  }
   0xd   :  { %2563 = vsyncadd [#allocation3], 4294942208  ;;  %v2216_v0 = vld [vmem:[#allocation2 + $0xe4] ss:$16 sps:$4 sm:$0xff]   ;;  %v2220_v2 = vld [vmem:[#allocation2 + $0xe0] ss:$16 sps:$4 sm:$0xff]  }
   0xe   :  { %v2218_v1 = vld [vmem:[#allocation2 + $0x2e4] ss:$16 sps:$4 sm:$0xff]   ;;  %1251 = vmatprep.subr.bf16.mxu0 %v2216_v0  ;;  %v2221_v3 = vld [vmem:[#allocation2 + $0x2e0] ss:$16 sps:$4 sm:$0xff]   ;;  %v36_v46 = vld [vmem:[%s2759_s0 + $0x8] sm:$0xff]  ;;  %vm1247_vm0 = vcmask 130048  }
   0xf   :  { %1292 = vmatprep.subr.bf16.mxu1 %v2218_v1  ;;  %v2222_v4 = vld [vmem:[#allocation2 + $0xc4] ss:$16 sps:$4 sm:$0xff]   ;;  %1252 = vmatpush1.bf16.msra.mxu0 %v2220_v2  ;;  %v2226_v6 = vld [vmem:[#allocation2 + $0xc0] ss:$16 sps:$4 sm:$0xff]   ;;  %v2604_v49 = vpack.c.bf16 %v36_v46, %v36_v46  ;;  %v38_v50 = vld [vmem:[%s2759_s0 + $0x18] sm:$0xff] }
  0x10   :  { %1293 = vmatpush1.bf16.msra.mxu1 %v2221_v3  ;;  %v2224_v5 = vld [vmem:[#allocation2 + $0x2c4] ss:$16 sps:$4 sm:$0xff]   ;;  %1253 = vmatprep.subr.bf16.mxu0 %v2222_v4  ;;  %v2227_v7 = vld [vmem:[#allocation2 + $0x2c0] ss:$16 sps:$4 sm:$0xff]   ;;  %v2609_v52 = vpack.c.bf16 %v38_v50, %v38_v50 }
  0x11   :  { %1294 = vmatprep.subr.bf16.mxu1 %v2224_v5  ;;  %v2228_v8 = vld [vmem:[#allocation2 + $0xa4] ss:$16 sps:$4 sm:$0xff]   ;;  %v2232_v10 = vld [vmem:[#allocation2 + $0xa0] ss:$16 sps:$4 sm:$0xff]   ;;  %1283 = vmatprep.mubr.bf16.mxu0 %v2604_v49 }
  0x12   :  { %v2230_v9 = vld [vmem:[#allocation2 + $0x2a4] ss:$16 sps:$4 sm:$0xff]   ;;  %v2233_v11 = vld [vmem:[#allocation2 + $0x2a0] ss:$16 sps:$4 sm:$0xff]   ;;  %1324 = vmatprep.mubr.bf16.mxu1 %v2609_v52 }
  0x13   :  { %1254 = vmatpush1.bf16.msra.mxu0 %v2226_v6  ;;  %v2234_v12 = vld [vmem:[#allocation2 + $0x84] ss:$16 sps:$4 sm:$0xff]   ;;  %v2238_v14 = vld [vmem:[#allocation2 + $0x80] ss:$16 sps:$4 sm:$0xff]  }
  0x14   :  { %1295 = vmatpush1.bf16.msra.mxu1 %v2227_v7  ;;  %1255 = vmatprep.subr.bf16.mxu0 %v2228_v8  ;;  %v2236_v13 = vld [vmem:[#allocation2 + $0x284] ss:$16 sps:$4 sm:$0xff]   ;;  %v2239_v15 = vld [vmem:[#allocation2 + $0x280] ss:$16 sps:$4 sm:$0xff]  }
  0x15   :  { %1296 = vmatprep.subr.bf16.mxu1 %v2230_v9  ;;  %v2240_v16 = vld [vmem:[#allocation2 + $0x64] ss:$16 sps:$4 sm:$0xff]   ;;  %v2244_v18 = vld [vmem:[#allocation2 + $0x60] ss:$16 sps:$4 sm:$0xff]  }
  0x16   :  { %v2242_v17 = vld [vmem:[#allocation2 + $0x264] ss:$16 sps:$4 sm:$0xff]   ;;  %v2245_v19 = vld [vmem:[#allocation2 + $0x260] ss:$16 sps:$4 sm:$0xff]  }
  0x17   :  { %1256 = vmatpush1.bf16.msra.mxu0 %v2232_v10  ;;  %v2246_v20 = vld [vmem:[#allocation2 + $0x44] ss:$16 sps:$4 sm:$0xff]   ;;  %v2250_v22 = vld [vmem:[#allocation2 + $0x40] ss:$16 sps:$4 sm:$0xff]  }
  0x18   :  { %1297 = vmatpush1.bf16.msra.mxu1 %v2233_v11  ;;  %1257 = vmatprep.subr.bf16.mxu0 %v2234_v12  ;;  %v2248_v21 = vld [vmem:[#allocation2 + $0x244] ss:$16 sps:$4 sm:$0xff]   ;;  %v2251_v23 = vld [vmem:[#allocation2 + $0x240] ss:$16 sps:$4 sm:$0xff]  }
  0x19   :  { %1298 = vmatprep.subr.bf16.mxu1 %v2236_v13  ;;  %v2252_v24 = vld [vmem:[#allocation2 + $0x24] ss:$16 sps:$4 sm:$0xff]   ;;  %v2256_v26 = vld [vmem:[#allocation2 + $0x20] ss:$16 sps:$4 sm:$0xff]   ;;  %v2323_v13 = vld [vmem:[#allocation2 + $0xec] ss:$16 sps:$4 sm:$0xff]  }
  0x1a   :  { %v2254_v25 = vld [vmem:[#allocation2 + $0x224] ss:$16 sps:$4 sm:$0xff]   ;;  %v2257_v27 = vld [vmem:[#allocation2 + $0x220] ss:$16 sps:$4 sm:$0xff]  }
  0x1b   :  { %1258 = vmatpush1.bf16.msra.mxu0 %v2238_v14  ;;  %v2258_v28 = vld [vmem:[#allocation2 + $0x4] ss:$16 sps:$4 sm:$0xff]   ;;  %v2262_v30 = vld [vmem:[#allocation2] ss:$16 sps:$4 sm:$0xff]  }
  0x1c   :  { %1299 = vmatpush1.bf16.msra.mxu1 %v2239_v15  ;;  %1259 = vmatprep.subr.bf16.mxu0 %v2240_v16  ;;  %v2260_v29 = vld [vmem:[#allocation2 + $0x204] ss:$16 sps:$4 sm:$0xff]   ;;  %v2263_v31 = vld [vmem:[#allocation2 + $0x200] ss:$16 sps:$4 sm:$0xff]   ;;  %v2567_v16 = vmov 0  }
  0x1d   :  { %1300 = vmatprep.subr.bf16.mxu1 %v2242_v17  ;;  %v2264_v32 = vld [vmem:[#allocation2 + $0x1e4] ss:$16 sps:$4 sm:$0xff]   ;;  %v2268_v34 = vld [vmem:[#allocation2 + $0x1e0] ss:$16 sps:$4 sm:$0xff]  }
  0x1e   :  { %v2266_v33 = vld [vmem:[#allocation2 + $0x3e4] ss:$16 sps:$4 sm:$0xff]   ;;  %v2269_v35 = vld [vmem:[#allocation2 + $0x3e0] ss:$16 sps:$4 sm:$0xff]  }
  0x1f   :  { %1260 = vmatpush1.bf16.msra.mxu0 %v2244_v18  ;;  %v2270_v36 = vld [vmem:[#allocation2 + $0x1c4] ss:$16 sps:$4 sm:$0xff]   ;;  %v2274_v38 = vld [vmem:[#allocation2 + $0x1c0] ss:$16 sps:$4 sm:$0xff]   ;;  %v2321_v18 = vld [vmem:[#allocation2 + $0xe8] ss:$16 sps:$4 sm:$0xff]  }
  0x20   :  { %1301 = vmatpush1.bf16.msra.mxu1 %v2245_v19  ;;  %1261 = vmatprep.subr.bf16.mxu0 %v2246_v20  ;;  %v2272_v37 = vld [vmem:[#allocation2 + $0x3c4] ss:$16 sps:$4 sm:$0xff]   ;;  %v2275_v39 = vld [vmem:[#allocation2 + $0x3c0] ss:$16 sps:$4 sm:$0xff]  }
  0x21   :  { %1302 = vmatprep.subr.bf16.mxu1 %v2248_v21  ;;  %v2276_v40 = vld [vmem:[#allocation2 + $0x1a4] ss:$16 sps:$4 sm:$0xff]   ;;  %v2280_v42 = vld [vmem:[#allocation2 + $0x1a0] ss:$16 sps:$4 sm:$0xff]   ;;  %v2329_v21 = vld [vmem:[#allocation2 + $0xcc] ss:$16 sps:$4 sm:$0xff]  }
  0x22   :  { %v2278_v41 = vld [vmem:[#allocation2 + $0x3a4] ss:$16 sps:$4 sm:$0xff]   ;;  %v2281_v43 = vld [vmem:[#allocation2 + $0x3a0] ss:$16 sps:$4 sm:$0xff]  }
  0x23   :  { %1262 = vmatpush1.bf16.msra.mxu0 %v2250_v22  ;;  %v2282_v44 = vld [vmem:[#allocation2 + $0x184] ss:$16 sps:$4 sm:$0xff]   ;;  %v2286_v47 = vld [vmem:[#allocation2 + $0x180] ss:$16 sps:$4 sm:$0xff]  }
  0x24   :  { %1303 = vmatpush1.bf16.msra.mxu1 %v2251_v23  ;;  %1263 = vmatprep.subr.bf16.mxu0 %v2252_v24  ;;  %v2284_v45 = vld [vmem:[#allocation2 + $0x384] ss:$16 sps:$4 sm:$0xff]   ;;  %v2287_v48 = vld [vmem:[#allocation2 + $0x380] ss:$16 sps:$4 sm:$0xff]   ;;  %v2327_v23 = vld [vmem:[#allocation2 + $0xc8] ss:$16 sps:$4 sm:$0xff]  }
  0x25   :  { %1304 = vmatprep.subr.bf16.mxu1 %v2254_v25  ;;  %v2288_v51 = vld [vmem:[#allocation2 + $0x164] ss:$16 sps:$4 sm:$0xff]   ;;  %v2292_v54 = vld [vmem:[#allocation2 + $0x160] ss:$16 sps:$4 sm:$0xff]   ;;  %v2335_v25 = vld [vmem:[#allocation2 + $0xac] ss:$16 sps:$4 sm:$0xff]  }
  0x26   :  { %v2290_v53 = vld [vmem:[#allocation2 + $0x364] ss:$16 sps:$4 sm:$0xff]   ;;  %v2293_v55 = vld [vmem:[#allocation2 + $0x360] ss:$16 sps:$4 sm:$0xff]  }
  0x27   :  { %1264 = vmatpush1.bf16.msra.mxu0 %v2256_v26  ;;  %v2294_v56 = vld [vmem:[#allocation2 + $0x144] ss:$16 sps:$4 sm:$0xff]   ;;  %v2298_v58 = vld [vmem:[#allocation2 + $0x140] ss:$16 sps:$4 sm:$0xff]  }
  0x28   :  { %1305 = vmatpush1.bf16.msra.mxu1 %v2257_v27  ;;  %1265 = vmatprep.subr.bf16.mxu0 %v2258_v28  ;;  %v2296_v57 = vld [vmem:[#allocation2 + $0x344] ss:$16 sps:$4 sm:$0xff]   ;;  %v2299_v59 = vld [vmem:[#allocation2 + $0x340] ss:$16 sps:$4 sm:$0xff]   ;;  %v2333_v27 = vld [vmem:[#allocation2 + $0xa8] ss:$16 sps:$4 sm:$0xff]  }
  0x29   :  { %1306 = vmatprep.subr.bf16.mxu1 %v2260_v29  ;;  %v2300_v60 = vld [vmem:[#allocation2 + $0x124] ss:$16 sps:$4 sm:$0xff]   ;;  %v2304_v62 = vld [vmem:[#allocation2 + $0x120] ss:$16 sps:$4 sm:$0xff]   ;;  %v2341_v29 = vld [vmem:[#allocation2 + $0x8c] ss:$16 sps:$4 sm:$0xff]  }
  0x2a   :  { %v2302_v61 = vld [vmem:[#allocation2 + $0x324] ss:$16 sps:$4 sm:$0xff]   ;;  %v2305_v63 = vld [vmem:[#allocation2 + $0x320] ss:$16 sps:$4 sm:$0xff]  }
  0x2b   :  { %1266 = vmatpush1.bf16.msra.mxu0 %v2262_v30  ;;  %v2306_v0 = vld [vmem:[#allocation2 + $0x104] ss:$16 sps:$4 sm:$0xff]   ;;  %v2310_v2 = vld [vmem:[#allocation2 + $0x100] ss:$16 sps:$4 sm:$0xff]  }
  0x2c   :  { %1307 = vmatpush1.bf16.msra.mxu1 %v2263_v31  ;;  %1267 = vmatprep.subr.bf16.mxu0 %v2264_v32  ;;  %v2308_v1 = vld [vmem:[#allocation2 + $0x304] ss:$16 sps:$4 sm:$0xff]   ;;  %v2311_v3 = vld [vmem:[#allocation2 + $0x300] ss:$16 sps:$4 sm:$0xff]   ;;  %v2339_v31 = vld [vmem:[#allocation2 + $0x88] ss:$16 sps:$4 sm:$0xff]  }
  0x2d   :  { %1308 = vmatprep.subr.bf16.mxu1 %v2266_v33  ;;  %v35_v4 = vld [vmem:[%s2759_s0] sm:$0xff]  ;;  %v37_v5 = vld [vmem:[%s2759_s0 + $0x10] sm:$0xff]  ;;  %v2347_v33 = vld [vmem:[#allocation2 + $0x6c] ss:$16 sps:$4 sm:$0xff]  }
  0x2e   :  { %v2314_v6 = vld [vmem:[#allocation2 + $0x4e4] ss:$16 sps:$4 sm:$0xff]   ;;  %v2619_v8 = vpack.c.bf16 %v35_v4, %v35_v4  ;;  %v2621_v9 = vpack.c.bf16 %v37_v5, %v37_v5  ;;  %v2312_v10 = vld [vmem:[#allocation2 + $0x4e0] ss:$16 sps:$4 sm:$0xff]   ;;  %v2395_v4 = vld [vmem:[#allocation2 + $0x16c] ss:$16 sps:$4 sm:$0xff]  }
  0x2f   :  { %1268 = vmatpush2.bf16.msra.mxu0 %v2268_v34  ;;  %v2317_v7 = vld [vmem:[#allocation2 + $0x604] ss:$16 sps:$4 sm:$0xff]   ;;  %v2315_v11 = vld [vmem:[#allocation2 + $0x600] ss:$16 sps:$4 sm:$0xff]  }
  0x30   :  { %1309 = vmatpush2.bf16.msra.mxu1 %v2269_v35  ;;  %1269 = vmatprep.subr.bf16.mxu0 %v2270_v36  ;;  %v2320_v12 = vld [vmem:[#allocation2 + $0x4c4] ss:$16 sps:$4 sm:$0xff]   ;;  %v2318_v14 = vld [vmem:[#allocation2 + $0x4c0] ss:$16 sps:$4 sm:$0xff]   ;;  %v40_v35 = vld [vmem:[%s2759_s0 + $0x28] sm:$0xff] }
  0x31   :  { %1310 = vmatprep.subr.bf16.mxu1 %v2272_v37  ;;  %v41_v15 = vld [vmem:[%s2759_s0 + $0x30] sm:$0xff]  ;;  %v2637_v36 = vpack.c.bf16 %v40_v35, %v40_v35  ;;  %v2345_v37 = vld [vmem:[#allocation2 + $0x68] ss:$16 sps:$4 sm:$0xff]   ;;  %v2434_v35 = vld [vmem:[#allocation2 + $0x26c] ss:$16 sps:$4 sm:$0xff]  }
  0x32   :  { %v2326_v17 = vld [vmem:[#allocation2 + $0x4a4] ss:$16 sps:$4 sm:$0xff]   ;;  %v2629_v19 = vpack.c.bf16 %v41_v15, %v41_v15  ;;  %v2324_v20 = vld [vmem:[#allocation2 + $0x4a0] ss:$16 sps:$4 sm:$0xff]  }
  0x33   :  { %1270 = vmatpush2.bf16.msra.mxu0 %v2274_v38  ;;  %v2332_v22 = vld [vmem:[#allocation2 + $0x484] ss:$16 sps:$4 sm:$0xff]   ;;  %v2330_v24 = vld [vmem:[#allocation2 + $0x480] ss:$16 sps:$4 sm:$0xff]  }
  0x34   :  { %1311 = vmatpush2.bf16.msra.mxu1 %v2275_v39  ;;  %1271 = vmatprep.subr.bf16.mxu0 %v2276_v40  ;;  %v2338_v26 = vld [vmem:[#allocation2 + $0x464] ss:$16 sps:$4 sm:$0xff]   ;;  %v2336_v28 = vld [vmem:[#allocation2 + $0x460] ss:$16 sps:$4 sm:$0xff]   ;;  %v2353_v39 = vld [vmem:[#allocation2 + $0x4c] ss:$16 sps:$4 sm:$0xff]  }
  0x35   :  { %1312 = vmatprep.subr.bf16.mxu1 %v2278_v41  ;;  %v2344_v30 = vld [vmem:[#allocation2 + $0x444] ss:$16 sps:$4 sm:$0xff]   ;;  %v2342_v32 = vld [vmem:[#allocation2 + $0x440] ss:$16 sps:$4 sm:$0xff]   ;;  %v2351_v41 = vld [vmem:[#allocation2 + $0x48] ss:$16 sps:$4 sm:$0xff]  }
  0x36   :  { %v2350_v34 = vld [vmem:[#allocation2 + $0x424] ss:$16 sps:$4 sm:$0xff]   ;;  %v2348_v38 = vld [vmem:[#allocation2 + $0x420] ss:$16 sps:$4 sm:$0xff]  }
  0x37   :  { %1272 = vmatpush2.bf16.msra.mxu0 %v2280_v42  ;;  %v2356_v40 = vld [vmem:[#allocation2 + $0x404] ss:$16 sps:$4 sm:$0xff]   ;;  %v2354_v42 = vld [vmem:[#allocation2 + $0x400] ss:$16 sps:$4 sm:$0xff]  }
  0x38   :  { %1313 = vmatpush2.bf16.msra.mxu1 %v2281_v43  ;;  %1273 = vmatprep.subr.bf16.mxu0 %v2282_v44  ;;  %v2359_v43 = vld [vmem:[#allocation2 + $0x2c] ss:$16 sps:$4 sm:$0xff]   ;;  %v2362_v44 = vld [vmem:[#allocation2 + $0x5e4] ss:$16 sps:$4 sm:$0xff]   ;;  %v2360_v46 = vld [vmem:[#allocation2 + $0x5e0] ss:$16 sps:$4 sm:$0xff]  }
  0x39   :  { %1314 = vmatprep.subr.bf16.mxu1 %v2284_v45  ;;  %v2357_v45 = vld [vmem:[#allocation2 + $0x28] ss:$16 sps:$4 sm:$0xff]   ;;  %v2366_v50 = vld [vmem:[#allocation2 + $0x5c0] ss:$16 sps:$4 sm:$0xff]   ;;  %v2398_v5 = vld [vmem:[#allocation2 + $0x524] ss:$16 sps:$4 sm:$0xff]  }
  0x3a   :  { %v39_v15 = vld [vmem:[%s2759_s0 + $0x20] sm:$0xff] }
  0x3b   :  { %1274 = vmatpush2.bf16.msra.mxu0 %v2286_v47  ;;  %v2365_v47 = vld [vmem:[#allocation2 + $0xc] ss:$16 sps:$4 sm:$0xff]  }
  0x3c   :  { %1315 = vmatpush2.bf16.msra.mxu1 %v2287_v48  ;;  %1275 = vmatprep.subr.bf16.mxu0 %v2288_v51  ;;  %v2368_v48 = vld [vmem:[#allocation2 + $0x5c4] ss:$16 sps:$4 sm:$0xff]   ;;  %v2371_v51 = vld [vmem:[#allocation2 + $0x1ec] ss:$16 sps:$4 sm:$0xff]  }
  0x3d   :  { %1316 = vmatprep.subr.bf16.mxu1 %v2290_v53  ;;  %v2374_v53 = vld [vmem:[#allocation2 + $0x5a4] ss:$16 sps:$4 sm:$0xff]  }
  0x3f   :  { %1276 = vmatpush2.bf16.msra.mxu0 %v2292_v54  ;;  %v2369_v54 = vld [vmem:[#allocation2 + $0x1e8] ss:$16 sps:$4 sm:$0xff]  }
  0x40   :  { %1317 = vmatpush2.bf16.msra.mxu1 %v2293_v55  ;;  %1277 = vmatprep.subr.bf16.mxu0 %v2294_v56  ;;  %v2372_v55 = vld [vmem:[#allocation2 + $0x5a0] ss:$16 sps:$4 sm:$0xff]   ;;  %v2377_v56 = vld [vmem:[#allocation2 + $0x1cc] ss:$16 sps:$4 sm:$0xff]  }
  0x41   :  { %1318 = vmatprep.subr.bf16.mxu1 %v2296_v57  ;;  %v2380_v57 = vld [vmem:[#allocation2 + $0x584] ss:$16 sps:$4 sm:$0xff]  }
  0x43   :  { %1278 = vmatpush2.bf16.msra.mxu0 %v2298_v58  ;;  %v2375_v58 = vld [vmem:[#allocation2 + $0x1c8] ss:$16 sps:$4 sm:$0xff]  }
  0x44   :  { %1319 = vmatpush2.bf16.msra.mxu1 %v2299_v59  ;;  %1279 = vmatprep.subr.bf16.mxu0 %v2300_v60  ;;  %v2378_v59 = vld [vmem:[#allocation2 + $0x580] ss:$16 sps:$4 sm:$0xff]   ;;  %v2383_v60 = vld [vmem:[#allocation2 + $0x1ac] ss:$16 sps:$4 sm:$0xff]  }
  0x45   :  { %1320 = vmatprep.subr.bf16.mxu1 %v2302_v61  ;;  %v2386_v61 = vld [vmem:[#allocation2 + $0x564] ss:$16 sps:$4 sm:$0xff]  }
  0x47   :  { %1280 = vmatpush2.bf16.msra.mxu0 %v2304_v62  ;;  %v2381_v62 = vld [vmem:[#allocation2 + $0x1a8] ss:$16 sps:$4 sm:$0xff]  }
  0x48   :  { %1321 = vmatpush2.bf16.msra.mxu1 %v2305_v63  ;;  %1281 = vmatprep.subr.bf16.mxu0 %v2306_v0  ;;  %v2384_v63 = vld [vmem:[#allocation2 + $0x560] ss:$16 sps:$4 sm:$0xff]   ;;  %v2389_v0 = vld [vmem:[#allocation2 + $0x18c] ss:$16 sps:$4 sm:$0xff]  }
  0x49   :  { %1322 = vmatprep.subr.bf16.mxu1 %v2308_v1  ;;  %v2392_v1 = vld [vmem:[#allocation2 + $0x544] ss:$16 sps:$4 sm:$0xff]  }
  0x4b   :  { %1282 = vmatpush2.bf16.msra.mxu0 %v2310_v2  ;;  %v2387_v2 = vld [vmem:[#allocation2 + $0x188] ss:$16 sps:$4 sm:$0xff]  }
  0x4c   :  { %1323 = vmatpush2.bf16.msra.mxu1 %v2311_v3  ;;  %1333 = vmatprep.subr.bf16.mxu0 %v2314_v6  ;;  %v2390_v3 = vld [vmem:[#allocation2 + $0x540] ss:$16 sps:$4 sm:$0xff]   ;;  %v2393_v6 = vld [vmem:[#allocation2 + $0x168] ss:$16 sps:$4 sm:$0xff]  }
  0x4d   :  { %1388 = vmatprep.subr.bf16.mxu1 %v2317_v7  ;;  %v2396_v7 = vld [vmem:[#allocation2 + $0x520] ss:$16 sps:$4 sm:$0xff]  }
  0x4e   :  { %1284 = vmatmul.mubr.bf16.vlgmr.msra.gmra.mxu0 %v2619_v8 }
  0x4f   :  { %1325 = vmatmul.mubr.bf16.vlgmr.msra.gmra.mxu1 %v2621_v9  ;;  %1334 = vmatpush1.bf16.msra.mxu0 %v2312_v10  ;;  %v2401_v10 = vld [vmem:[#allocation2 + $0x14c] ss:$16 sps:$4 sm:$0xff]  }
  0x50   :  { %1389 = vmatpush1.bf16.msra.mxu1 %v2315_v11  ;;  %1335 = vmatprep.subr.bf16.mxu0 %v2320_v12  ;;  %v2404_v11 = vld [vmem:[#allocation2 + $0x504] ss:$16 sps:$4 sm:$0xff]   ;;  %v2399_v12 = vld [vmem:[#allocation2 + $0x148] ss:$16 sps:$4 sm:$0xff]  }
  0x51   :  { %1406 = vmatprep.mubr.bf16.mxu1 %v2567_v16  ;;  %1415 = vmatprep.subr.bf16.mxu1 %v2323_v13  ;;  %v2402_v13 = vld [vmem:[#allocation2 + $0x500] ss:$16 sps:$4 sm:$0xff]  }
  0x52   :  { %1365 = vmatprep.mubr.bf16.mxu0 %v2637_v36 }
  0x53   :  { %1336 = vmatpush1.bf16.msra.mxu0 %v2318_v14  ;;  %v2407_v14 = vld [vmem:[#allocation2 + $0x12c] ss:$16 sps:$4 sm:$0xff]  }
  0x54   :  { %1337 = vmatprep.subr.bf16.mxu0 %v2326_v17  ;;  %v2410_v17 = vld [vmem:[#allocation2 + $0x2ec] ss:$16 sps:$4 sm:$0xff]  }
  0x57   :  { %2133 = vmatmul.mubr.msk.bf16.vlgmr.msra.gmra.mxu1 %vm1247_vm0, %v2629_v19  ;;  %1338 = vmatpush1.bf16.msra.mxu0 %v2324_v20  ;;  %v2643_v20 = vpack.c.bf16 %v39_v15, %v39_v15  ;;  %v2497_v15 = vld [vmem:[#allocation2 + $0x54c] ss:$16 sps:$4 sm:$0xff]  }
  0x58   :  { %1416 = vmatpush1.bf16.msra.mxu1 %v2321_v18  ;;  %1339 = vmatprep.subr.bf16.mxu0 %v2332_v22  ;;  %v2405_v18 = vld [vmem:[#allocation2 + $0x128] ss:$16 sps:$4 sm:$0xff]   ;;  %v2413_v22 = vld [vmem:[#allocation2 + $0x10c] ss:$16 sps:$4 sm:$0xff]  }
  0x59   :  { %1417 = vmatprep.subr.bf16.mxu1 %v2329_v21  ;;  %1447 = vmatprep.mubr.bf16.mxu1 %v2604_v49  ;;  %v2363_v49 = vld [vmem:[#allocation2 + $0x8] ss:$16 sps:$4 sm:$0xff]  }
  0x5a   :  { %v2408_v21 = vld [vmem:[#allocation2 + $0x2e8] ss:$16 sps:$4 sm:$0xff]  }
  0x5b   :  { %1340 = vmatpush1.bf16.msra.mxu0 %v2330_v24  ;;  %v2411_v24 = vld [vmem:[#allocation2 + $0x108] ss:$16 sps:$4 sm:$0xff]  }
  0x5c   :  { %1418 = vmatpush1.bf16.msra.mxu1 %v2327_v23  ;;  %1341 = vmatprep.subr.bf16.mxu0 %v2338_v26  ;;  %v2416_v23 = vld [vmem:[#allocation2 + $0x2cc] ss:$16 sps:$4 sm:$0xff]  }
  0x5d   :  { %1419 = vmatprep.subr.bf16.mxu1 %v2335_v25  ;;  %v2414_v25 = vld [vmem:[#allocation2 + $0x2c8] ss:$16 sps:$4 sm:$0xff]   ;;  %v2419_v26 = vld [vmem:[#allocation2 + $0x4ec] ss:$16 sps:$4 sm:$0xff]  }
  0x5f   :  { %1342 = vmatpush1.bf16.msra.mxu0 %v2336_v28  ;;  %v2417_v28 = vld [vmem:[#allocation2 + $0x4e8] ss:$16 sps:$4 sm:$0xff]  }
  0x60   :  { %1420 = vmatpush1.bf16.msra.mxu1 %v2333_v27  ;;  %1343 = vmatprep.subr.bf16.mxu0 %v2344_v30  ;;  %v2422_v27 = vld [vmem:[#allocation2 + $0x2ac] ss:$16 sps:$4 sm:$0xff]  }
  0x61   :  { %1421 = vmatprep.subr.bf16.mxu1 %v2341_v29  ;;  %v2420_v29 = vld [vmem:[#allocation2 + $0x2a8] ss:$16 sps:$4 sm:$0xff]   ;;  %v2425_v30 = vld [vmem:[#allocation2 + $0x4cc] ss:$16 sps:$4 sm:$0xff]  }
  0x63   :  { %1344 = vmatpush1.bf16.msra.mxu0 %v2342_v32  ;;  %v2423_v32 = vld [vmem:[#allocation2 + $0x4c8] ss:$16 sps:$4 sm:$0xff]  }
  0x64   :  { %1422 = vmatpush1.bf16.msra.mxu1 %v2339_v31  ;;  %1345 = vmatprep.subr.bf16.mxu0 %v2350_v34  ;;  %v2428_v31 = vld [vmem:[#allocation2 + $0x28c] ss:$16 sps:$4 sm:$0xff]  }
  0x65   :  { %1423 = vmatprep.subr.bf16.mxu1 %v2347_v33  ;;  %v2426_v33 = vld [vmem:[#allocation2 + $0x288] ss:$16 sps:$4 sm:$0xff]   ;;  %v2431_v34 = vld [vmem:[#allocation2 + $0x4ac] ss:$16 sps:$4 sm:$0xff]  }
  0x67   :  { %1346 = vmatpush1.bf16.msra.mxu0 %v2348_v38  ;;  %v2432_v38 = vld [vmem:[#allocation2 + $0x268] ss:$16 sps:$4 sm:$0xff]  }
  0x68   :  { %1424 = vmatpush1.bf16.msra.mxu1 %v2345_v37  ;;  %1347 = vmatprep.subr.bf16.mxu0 %v2356_v40  ;;  %v2429_v37 = vld [vmem:[#allocation2 + $0x4a8] ss:$16 sps:$4 sm:$0xff]  }
  0x69   :  { %1425 = vmatprep.subr.bf16.mxu1 %v2353_v39  ;;  %v2440_v39 = vld [vmem:[#allocation2 + $0x24c] ss:$16 sps:$4 sm:$0xff]   ;;  %v2435_v40 = vld [vmem:[#allocation2 + $0x488] ss:$16 sps:$4 sm:$0xff]  }
  0x6b   :  { %1348 = vmatpush1.bf16.msra.mxu0 %v2354_v42  ;;  %v2443_v42 = vld [vmem:[#allocation2 + $0x46c] ss:$16 sps:$4 sm:$0xff]  }
  0x6c   :  { %1426 = vmatpush1.bf16.msra.mxu1 %v2351_v41  ;;  %1349 = vmatprep.subr.bf16.mxu0 %v2362_v44  ;;  %v2438_v41 = vld [vmem:[#allocation2 + $0x248] ss:$16 sps:$4 sm:$0xff]  }
  0x6d   :  { %1427 = vmatprep.subr.bf16.mxu1 %v2359_v43  ;;  %v2441_v43 = vld [vmem:[#allocation2 + $0x468] ss:$16 sps:$4 sm:$0xff]  }
  0x6e   :  { %v2444_v44 = vld [vmem:[#allocation2 + $0x228] ss:$16 sps:$4 sm:$0xff]  }
  0x6f   :  { %1350 = vmatpush2.bf16.msra.mxu0 %v2360_v46  ;;  %v2452_v46 = vld [vmem:[#allocation2 + $0x20c] ss:$16 sps:$4 sm:$0xff]  }
  0x70   :  { %1428 = vmatpush1.bf16.msra.mxu1 %v2357_v45  ;;  %1351 = vmatprep.subr.bf16.mxu0 %v2368_v48  ;;  %v2449_v45 = vld [vmem:[#allocation2 + $0x44c] ss:$16 sps:$4 sm:$0xff]  }
  0x71   :  { %1429 = vmatprep.subr.bf16.mxu1 %v2365_v47  ;;  %v2450_v47 = vld [vmem:[#allocation2 + $0x208] ss:$16 sps:$4 sm:$0xff]   ;;  %v2455_v48 = vld [vmem:[#allocation2 + $0x42c] ss:$16 sps:$4 sm:$0xff]  }
  0x73   :  { %1352 = vmatpush2.bf16.msra.mxu0 %v2366_v50  ;;  %v2453_v50 = vld [vmem:[#allocation2 + $0x428] ss:$16 sps:$4 sm:$0xff]  }
  0x74   :  { %1430 = vmatpush1.bf16.msra.mxu1 %v2363_v49  ;;  %1353 = vmatprep.subr.bf16.mxu0 %v2374_v53  ;;  %v2458_v49 = vld [vmem:[#allocation2 + $0x3ec] ss:$16 sps:$4 sm:$0xff]  }
  0x75   :  { %1431 = vmatprep.subr.bf16.mxu1 %v2371_v51  ;;  %v2456_v51 = vld [vmem:[#allocation2 + $0x3e8] ss:$16 sps:$4 sm:$0xff]   ;;  %v2461_v53 = vld [vmem:[#allocation2 + $0x40c] ss:$16 sps:$4 sm:$0xff]  }
  0x77   :  { %1354 = vmatpush2.bf16.msra.mxu0 %v2372_v55  ;;  %v2459_v55 = vld [vmem:[#allocation2 + $0x408] ss:$16 sps:$4 sm:$0xff]  }
  0x78   :  { %1432 = vmatpush2.bf16.msra.mxu1 %v2369_v54  ;;  %1355 = vmatprep.subr.bf16.mxu0 %v2380_v57  ;;  %v2464_v54 = vld [vmem:[#allocation2 + $0x3cc] ss:$16 sps:$4 sm:$0xff]  }
  0x79   :  { %1433 = vmatprep.subr.bf16.mxu1 %v2377_v56  ;;  %v2462_v56 = vld [vmem:[#allocation2 + $0x3c8] ss:$16 sps:$4 sm:$0xff]   ;;  %v2467_v57 = vld [vmem:[#allocation2 + $0x5ec] ss:$16 sps:$4 sm:$0xff]  }
  0x7b   :  { %1356 = vmatpush2.bf16.msra.mxu0 %v2378_v59  ;;  %v2465_v59 = vld [vmem:[#allocation2 + $0x5e8] ss:$16 sps:$4 sm:$0xff]  }
  0x7c   :  { %1434 = vmatpush2.bf16.msra.mxu1 %v2375_v58  ;;  %1357 = vmatprep.subr.bf16.mxu0 %v2386_v61  ;;  %v2470_v58 = vld [vmem:[#allocation2 + $0x3ac] ss:$16 sps:$4 sm:$0xff]  }
  0x7d   :  { %1435 = vmatprep.subr.bf16.mxu1 %v2383_v60  ;;  %v2468_v60 = vld [vmem:[#allocation2 + $0x3a8] ss:$16 sps:$4 sm:$0xff]   ;;  %v2473_v61 = vld [vmem:[#allocation2 + $0x5cc] ss:$16 sps:$4 sm:$0xff]  }
  0x7f   :  { %1358 = vmatpush2.bf16.msra.mxu0 %v2384_v63  ;;  %v2471_v63 = vld [vmem:[#allocation2 + $0x5c8] ss:$16 sps:$4 sm:$0xff]  }
  0x80   :  { %1436 = vmatpush2.bf16.msra.mxu1 %v2381_v62  ;;  %1359 = vmatprep.subr.bf16.mxu0 %v2392_v1  ;;  %v2476_v62 = vld [vmem:[#allocation2 + $0x38c] ss:$16 sps:$4 sm:$0xff]  }
  0x81   :  { %1437 = vmatprep.subr.bf16.mxu1 %v2389_v0  ;;  %v2474_v0 = vld [vmem:[#allocation2 + $0x388] ss:$16 sps:$4 sm:$0xff]   ;;  %v2479_v1 = vld [vmem:[#allocation2 + $0x5ac] ss:$16 sps:$4 sm:$0xff]  }
  0x83   :  { %1360 = vmatpush2.bf16.msra.mxu0 %v2390_v3  ;;  %v2477_v3 = vld [vmem:[#allocation2 + $0x5a8] ss:$16 sps:$4 sm:$0xff]  }
  0x84   :  { %1438 = vmatpush2.bf16.msra.mxu1 %v2387_v2  ;;  %1361 = vmatprep.subr.bf16.mxu0 %v2398_v5  ;;  %v2482_v2 = vld [vmem:[#allocation2 + $0x36c] ss:$16 sps:$4 sm:$0xff]  }
  0x85   :  { %1439 = vmatprep.subr.bf16.mxu1 %v2395_v4  ;;  %v2480_v4 = vld [vmem:[#allocation2 + $0x368] ss:$16 sps:$4 sm:$0xff]   ;;  %v2485_v5 = vld [vmem:[#allocation2 + $0x58c] ss:$16 sps:$4 sm:$0xff]  }
  0x87   :  { %1362 = vmatpush2.bf16.msra.mxu0 %v2396_v7  ;;  %v2483_v7 = vld [vmem:[#allocation2 + $0x588] ss:$16 sps:$4 sm:$0xff]  }
  0x88   :  { %1440 = vmatpush2.bf16.msra.mxu1 %v2393_v6  ;;  %1363 = vmatprep.subr.bf16.mxu0 %v2404_v11  ;;  %v2488_v6 = vld [vmem:[#allocation2 + $0x34c] ss:$16 sps:$4 sm:$0xff]  }
  0x89   :  { %1441 = vmatprep.subr.bf16.mxu1 %v2401_v10  ;;  %v2486_v10 = vld [vmem:[#allocation2 + $0x348] ss:$16 sps:$4 sm:$0xff]   ;;  %v2491_v11 = vld [vmem:[#allocation2 + $0x56c] ss:$16 sps:$4 sm:$0xff]  }
  0x8b   :  { %1364 = vmatpush2.bf16.msra.mxu0 %v2402_v13  ;;  %v2489_v13 = vld [vmem:[#allocation2 + $0x568] ss:$16 sps:$4 sm:$0xff]  }
  0x8c   :  { %1442 = vmatpush2.bf16.msra.mxu1 %v2399_v12  ;;  %1456 = vmatprep.subr.bf16.mxu0 %v2410_v17  ;;  %v2494_v12 = vld [vmem:[#allocation2 + $0x32c] ss:$16 sps:$4 sm:$0xff]  }
  0x8d   :  { %1443 = vmatprep.subr.bf16.mxu1 %v2407_v14  ;;  %v2492_v14 = vld [vmem:[#allocation2 + $0x328] ss:$16 sps:$4 sm:$0xff]   ;;  %v2500_v17 = vld [vmem:[#allocation2 + $0x30c] ss:$16 sps:$4 sm:$0xff]  }
  0x8e   :  { %1366 = vmatmul.mubr.bf16.vlgmr.msra.gmra.mxu0 %v2643_v20 }
  0x8f   :  { %1457 = vmatpush1.bf16.msra.mxu0 %v2408_v21  ;;  %1488 = vmatprep.mubr.bf16.mxu0 %v2609_v52  ;;  %v2437_v52 = vld [vmem:[#allocation2 + $0x48c] ss:$16 sps:$4 sm:$0xff]   ;;  %v2498_v21 = vld [vmem:[#allocation2 + $0x308] ss:$16 sps:$4 sm:$0xff]  }
  0x90   :  { %1444 = vmatpush2.bf16.msra.mxu1 %v2405_v18  ;;  %1458 = vmatprep.subr.bf16.mxu0 %v2416_v23  ;;  %v2495_v18 = vld [vmem:[#allocation2 + $0x548] ss:$16 sps:$4 sm:$0xff]   ;;  %v2506_v23 = vld [vmem:[#allocation2 + $0x60c] ss:$16 sps:$4 sm:$0xff]  }
  0x91   :  { %1445 = vmatprep.subr.bf16.mxu1 %v2413_v22  ;;  %v2503_v22 = vld [vmem:[#allocation2 + $0x52c] ss:$16 sps:$4 sm:$0xff]  }
  0x93   :  { %1459 = vmatpush1.bf16.msra.mxu0 %v2414_v25  ;;  %v2504_v25 = vld [vmem:[#allocation2 + $0x608] ss:$16 sps:$4 sm:$0xff]  }
  0x94   :  { %1446 = vmatpush2.bf16.msra.mxu1 %v2411_v24  ;;  %1460 = vmatprep.subr.bf16.mxu0 %v2422_v27  ;;  %v2501_v24 = vld [vmem:[#allocation2 + $0x528] ss:$16 sps:$4 sm:$0xff]  }
  0x95   :  { %1497 = vmatprep.subr.bf16.mxu1 %v2419_v26  ;;  %v2509_v26 = vld [vmem:[#allocation2 + $0x50c] ss:$16 sps:$4 sm:$0xff]  }
  0x96   :  { %v2510_v27 = vld [vmem:[%s2762_s3 + $0x78] sm:$0xff]  }
  0x97   :  { %1448 = vmatmul.mubr.bf16.vlgmr.msra.gmra.mxu1 %v2619_v8  ;;  %1461 = vmatpush1.bf16.msra.mxu0 %v2420_v29  ;;  %v2446_v8 = vld [vmem:[#allocation2 + $0x22c] ss:$16 sps:$4 sm:$0xff]  }
  0x98   :  { %1498 = vmatpush1.bf16.msra.mxu1 %v2417_v28  ;;  %1462 = vmatprep.subr.bf16.mxu0 %v2428_v31  ;;  %v2507_v28 = vld [vmem:[#allocation2 + $0x508] ss:$16 sps:$4 sm:$0xff]  }
  0x99   :  { %1499 = vmatprep.subr.bf16.mxu1 %v2425_v30  ;;  %1529 = vmatprep.mubr.bf16.mxu1 %v2637_v36  ;;  %v2447_v36 = vld [vmem:[#allocation2 + $0x448] ss:$16 sps:$4 sm:$0xff]   ;;  %v2512_v30 = vld [vmem:[%s2762_s3 + $0x70] sm:$0xff]  }
  0x9a   :  { %v2511_v29 = vld [vmem:[%s2762_s3 + $0x38] sm:$0xff]   ;;  %v2515_v31 = vld [vmem:[%s2762_s3 + $0x28] sm:$0xff]  }
  0x9b   :  { %1463 = vmatpush1.bf16.msra.mxu0 %v2426_v33  ;;  %v2528_v33 = vld [vmem:[%s2762_s3 + $0xf0] sm:$0xff]  }
  0x9c   :  { %1500 = vmatpush1.bf16.msra.mxu1 %v2423_v32  ;;  %1464 = vmatprep.subr.bf16.mxu0 %v2434_v35  ;;  %v2527_v32 = vld [vmem:[%s2762_s3 + $0xb8] sm:$0xff]   ;;  %v2529_v35 = vld [vmem:[%s2762_s3 + $0xb0] sm:$0xff]  }
  0x9d   :  { %1501 = vmatprep.subr.bf16.mxu1 %v2431_v34  ;;  %v2517_v34 = vld [vmem:[%s2762_s3 + $0x20] sm:$0xff]  }
  0x9f   :  { %1465 = vmatpush1.bf16.msra.mxu0 %v2432_v38  ;;  %v2530_v38 = vld [vmem:[%s2762_s3 + $0xe8] sm:$0xff]  }
  0xa0   :  { %1502 = vmatpush1.bf16.msra.mxu1 %v2429_v37  ;;  %1466 = vmatprep.subr.bf16.mxu0 %v2440_v39  ;;  %v2518_v37 = vld [vmem:[%s2762_s3 + $0x58] sm:$0xff]   ;;  %v2531_v39 = vld [vmem:[%s2762_s3 + $0xa8] sm:$0xff]  }
  0xa1   :  { %1503 = vmatprep.subr.bf16.mxu1 %v2437_v52  ;;  %v2519_v52 = vld [vmem:[%s2762_s3 + $0x18] sm:$0xff]  }
  0xa3   :  { %1467 = vmatpush1.bf16.msra.mxu0 %v2438_v41  ;;  %v2532_v41 = vld [vmem:[%s2762_s3 + $0xe0] sm:$0xff]  }
  0xa4   :  { %1504 = vmatpush1.bf16.msra.mxu1 %v2435_v40  ;;  %1468 = vmatprep.subr.bf16.mxu0 %v2446_v8  ;;  %v2520_v40 = vld [vmem:[%s2762_s3 + $0x50] sm:$0xff]   ;;  %v2522_v8 = vld [vmem:[%s2762_s3 + $0x48] sm:$0xff]  }
  0xa5   :  { %1505 = vmatprep.subr.bf16.mxu1 %v2443_v42  ;;  %v2521_v42 = vld [vmem:[%s2762_s3 + $0x10] sm:$0xff]  }
  0xa7   :  { %1469 = vmatpush1.bf16.msra.mxu0 %v2444_v44  ;;  %v2524_v44 = vld [vmem:[%s2762_s3 + $0x40] sm:$0xff]  }
  0xa8   :  { %1506 = vmatpush1.bf16.msra.mxu1 %v2441_v43  ;;  %1470 = vmatprep.subr.bf16.mxu0 %v2452_v46  ;;  %v2523_v43 = vld [vmem:[%s2762_s3 + $0x8] sm:$0xff]   ;;  %v2533_v46 = vld [vmem:[%s2762_s3 + $0xa0] sm:$0xff]  }
  0xa9   :  { %1507 = vmatprep.subr.bf16.mxu1 %v2449_v45  ;;  %v2525_v45 = vld [vmem:[%s2762_s3] sm:$0xff]  }
  0xab   :  { %1471 = vmatpush1.bf16.msra.mxu0 %v2450_v47 }
  0xac   :  { %1508 = vmatpush1.bf16.msra.mxu1 %v2447_v36  ;;  %1472 = vmatprep.subr.bf16.mxu0 %v2458_v49 }
  0xad   :  { %1509 = vmatprep.subr.bf16.mxu1 %v2455_v48 }
  0xaf   :  { %1473 = vmatpush2.bf16.msra.mxu0 %v2456_v51  ;;  %v2535_v51 = vld [vmem:[%s2762_s3 + $0x98] sm:$0xff]  }
  0xb0   :  { %1510 = vmatpush1.bf16.msra.mxu1 %v2453_v50  ;;  %1474 = vmatprep.subr.bf16.mxu0 %v2464_v54  ;;  %v2534_v50 = vld [vmem:[%s2762_s3 + $0xd8] sm:$0xff]  }
  0xb1   :  { %1511 = vmatprep.subr.bf16.mxu1 %v2461_v53 }
  0xb3   :  { %1475 = vmatpush2.bf16.msra.mxu0 %v2462_v56 }
  0xb4   :  { %1512 = vmatpush1.bf16.msra.mxu1 %v2459_v55  ;;  %1476 = vmatprep.subr.bf16.mxu0 %v2470_v58  ;;  %v2537_v58 = vld [vmem:[%s2762_s3 + $0x90] sm:$0xff]  }
  0xb5   :  { %1513 = vmatprep.subr.bf16.mxu1 %v2467_v57  ;;  %v2536_v57 = vld [vmem:[%s2762_s3 + $0xd0] sm:$0xff]  }
  0xb7   :  { %1477 = vmatpush2.bf16.msra.mxu0 %v2468_v60 }
  0xb8   :  { %1514 = vmatpush2.bf16.msra.mxu1 %v2465_v59  ;;  %1478 = vmatprep.subr.bf16.mxu0 %v2476_v62  ;;  %v2539_v62 = vld [vmem:[%s2762_s3 + $0x88] sm:$0xff]  }
  0xb9   :  { %1515 = vmatprep.subr.bf16.mxu1 %v2473_v61  ;;  %v2538_v61 = vld [vmem:[%s2762_s3 + $0xc8] sm:$0xff]  }
  0xbb   :  { %1479 = vmatpush2.bf16.msra.mxu0 %v2474_v0 }
  0xbc   :  { %1516 = vmatpush2.bf16.msra.mxu1 %v2471_v63  ;;  %1480 = vmatprep.subr.bf16.mxu0 %v2482_v2  ;;  %v2541_v2 = vld [vmem:[%s2762_s3 + $0x80] sm:$0xff]  }
  0xbd   :  { %1517 = vmatprep.subr.bf16.mxu1 %v2479_v1  ;;  %v2540_v1 = vld [vmem:[%s2762_s3 + $0xc0] sm:$0xff]  }
  0xbf   :  { %1481 = vmatpush2.bf16.msra.mxu0 %v2480_v4 }
  0xc0   :  { %1518 = vmatpush2.bf16.msra.mxu1 %v2477_v3  ;;  %1482 = vmatprep.subr.bf16.mxu0 %v2488_v6  ;;  %v247_v3 = vlaneseq  ;;  %v245_v6 = vld [vmem:[%s2761_s2] sm:$0xf] }
  0xc1   :  { %1519 = vmatprep.subr.bf16.mxu1 %v2485_v5 }
  0xc2   :  { %v248_v4 = vshrl.u32 %v247_v3, 7 }
  0xc3   :  { %1483 = vmatpush2.bf16.msra.mxu0 %v2486_v10 }
  0xc4   :  { %1520 = vmatpush2.bf16.msra.mxu1 %v2483_v7  ;;  %1484 = vmatprep.subr.bf16.mxu0 %v2494_v12  ;;  %v249_v5 = vsub.s32 0, %v248_v4  ;;  %v253_v7 = vsub.s32 1, %v248_v4 }
  0xc5   :  { %1521 = vmatprep.subr.bf16.mxu1 %v2491_v11 }
  0xc6   :  { %v250_v10 = vrot.slane %v245_v6, %v249_v5  ;;  %v254_v11 = vrot.slane %v245_v6, %v253_v7 }
  0xc7   :  { %1485 = vmatpush2.bf16.msra.mxu0 %v2492_v14 }
  0xc8   :  { %1522 = vmatpush2.bf16.msra.mxu1 %v2489_v13  ;;  %1486 = vmatprep.subr.bf16.mxu0 %v2500_v17 }
  0xc9   :  { %1523 = vmatprep.subr.bf16.mxu1 %v2497_v15 }
  0xcb   :  { %1487 = vmatpush2.bf16.msra.mxu0 %v2498_v21 }
  0xcc   :  { %1524 = vmatpush2.bf16.msra.mxu1 %v2495_v18  ;;  %1552 = vmatprep.subr.bf16.mxu0 %v2506_v23 }
  0xcd   :  { %1525 = vmatprep.subr.bf16.mxu1 %v2503_v22 }
  0xce   :  { %1489 = vmatmul.mubr.bf16.vlgmr.msra.gmra.mxu0 %v2621_v9  ;;  %v2513_v9 = vld [vmem:[%s2762_s3 + $0x30] sm:$0xff]  }
  0xcf   :  { %1553 = vmatpush1.bf16.msra.mxu0 %v2504_v25  ;;  %1570 = vmatprep.mubr.bf16.mxu0 %v2567_v16  ;;  %v2514_v16 = vld [vmem:[%s2762_s3 + $0x68] sm:$0xff]  }
  0xd0   :  { %1526 = vmatpush2.bf16.msra.mxu1 %v2501_v24  ;;  %2168 = vmatprep.subr.bf16.mxu0 %v2510_v27 }
  0xd1   :  { %1527 = vmatprep.subr.bf16.mxu1 %v2509_v26 }
  0xd4   :  { %1528 = vmatpush2.bf16.msra.mxu1 %v2507_v28 }
  0xd6   :  { %2134 = vmatmul.mubr.msk.bf16.vlgmr.msra.gmra.mxu0 %vm1247_vm0, %v2629_v19  ;;  %v2526_v19 = vld [vmem:[%s2762_s3 + $0xf8] sm:$0xff]  }
  0xd7   :  { %1530 = vmatmul.mubr.bf16.vlgmr.msra.gmra.mxu1 %v2643_v20  ;;  %2169 = vmatpush3.bf16.msra.mxu0 %v2511_v29  ;;  %v2516_v20 = vld [vmem:[%s2762_s3 + $0x60] sm:$0xff]  }
  0xd8   :  { %2170 = vmatprep.subr.bf16.mxu0 %v2512_v30  ;;  %2190 = vmatprep.subr.bf16.mxu1 %v2526_v19  ;;  %v257_v19 = vsub.s32 2, %v248_v4 }
  0xd9   :  { %2191 = vmatpush3.bf16.msra.mxu1 %v2527_v32  ;;  %v261_v32 = vsub.s32 3, %v248_v4 }
  0xda   :  { %2192 = vmatprep.subr.bf16.mxu1 %v2528_v33 }
  0xdb   :  { %2171 = vmatpush3.bf16.msra.mxu0 %v2513_v9 }
  0xdc   :  { %2172 = vmatprep.subr.bf16.mxu0 %v2514_v16 }
  0xdd   :  { %2193 = vmatpush3.bf16.msra.mxu1 %v2529_v35 }
  0xde   :  { %2194 = vmatprep.subr.bf16.mxu1 %v2530_v38 }
  0xdf   :  { %2173 = vmatpush3.bf16.msra.mxu0 %v2515_v31 }
  0xe0   :  { %2174 = vmatprep.subr.bf16.mxu0 %v2516_v20 }
  0xe1   :  { %2195 = vmatpush3.bf16.msra.mxu1 %v2531_v39 }
  0xe2   :  { %2196 = vmatprep.subr.bf16.mxu1 %v2532_v41 }
  0xe3   :  { %2175 = vmatpush3.bf16.msra.mxu0 %v2517_v34  ;;  %v258_v34 = vrot.slane %v245_v6, %v257_v19 }
  0xe4   :  { %2176 = vmatprep.subr.bf16.mxu0 %v2518_v37  ;;  %v262_v37 = vrot.slane %v245_v6, %v261_v32 }
  0xe5   :  { %2197 = vmatpush3.bf16.msra.mxu1 %v2533_v46 }
  0xe6   :  { %2198 = vmatprep.subr.bf16.mxu1 %v2534_v50 }
  0xe7   :  { %2177 = vmatpush3.bf16.msra.mxu0 %v2519_v52 }
  0xe8   :  { %2178 = vmatprep.subr.bf16.mxu0 %v2520_v40 }
  0xe9   :  { %2199 = vmatpush3.bf16.msra.mxu1 %v2535_v51 }
  0xea   :  { %2200 = vmatprep.subr.bf16.mxu1 %v2536_v57 }
  0xeb   :  { %2179 = vmatpush3.bf16.msra.mxu0 %v2521_v42 }
  0xec   :  { %2180 = vmatprep.subr.bf16.mxu0 %v2522_v8 }
  0xed   :  { %2201 = vmatpush3.bf16.msra.mxu1 %v2537_v58 }
  0xee   :  { %2202 = vmatprep.subr.bf16.mxu1 %v2538_v61 }
  0xef   :  { %2181 = vmatpush3.bf16.msra.mxu0 %v2523_v43 }
  0xf0   :  { %2182 = vmatprep.subr.bf16.mxu0 %v2524_v44 }
  0xf1   :  { %2203 = vmatpush3.bf16.msra.mxu1 %v2539_v62 }
  0xf2   :  { %2204 = vmatprep.subr.bf16.mxu1 %v2540_v1 }
  0xf3   :  { %2183 = vmatpush3.bf16.msra.mxu0 %v2525_v45 }
  0xf5   :  { %2205 = vmatpush3.bf16.msra.mxu1 %v2541_v2 }
 0x10e   :  { %v1285_v36 = vpop.f32.mrf.mxu0 }
 0x10f   :  { %v1326_v47 = vpop.f32.mrf.mxu1  ;;  %v1286_v12 = vadd.f32 %v1285_v36, %v250_v10 }
 0x110   :  { %v1287_v48 = vpop.f32.mrf.mxu0 }
 0x111   :  { %v1328_v49 = vpop.f32.mrf.mxu1  ;;  %v1288_v13 = vadd.f32 %v1287_v48, %v254_v11  ;;  %v1327_v14 = vadd.f32 %v1326_v47, %v1286_v12 }
 0x112   :  { %v1289_v53 = vpop.f32.mrf.mxu0 }
 0x113   :  { %v1330_v54 = vpop.f32.mrf.mxu1  ;;  %v1329_v17 = vadd.f32 %v1328_v49, %v1288_v13 }
 0x114   :  { %v1290_v55 = vpop.f32.mrf.mxu0 }
 0x115   :  { %v1331_v56 = vpop.f32.mrf.mxu1 }
 0x117   :  { %v1408_v59 = vpop.f32.mrf.mxu1 }
 0x119   :  { %v1410_v60 = vpop.f32.mrf.mxu1 }
 0x11b   :  { %v1412_v63 = vpop.f32.mrf.mxu1 }
 0x11c   :  { %v2135_v63 = vld [vmem:[%s2763_s4] ss:$0 sm:$0xff] }
 0x11d   :  { %v1413_v0 = vpop.f32.mrf.mxu1 }
 0x14e   :  { %v1367_v15 = vpop.f32.mrf.mxu0 }
 0x14f   :  { %v1368_v18 = vadd.f32 %v1367_v15, %v1327_v14 }
 0x150   :  { %v1369_v21 = vpop.f32.mrf.mxu0 }
 0x151   :  { %v1409_v22 = vadd.f32 %v1408_v59, %v1368_v18  ;;  %v1370_v23 = vadd.f32 %v1369_v21, %v1329_v17 }
 0x152   :  { %v1371_v24 = vpop.f32.mrf.mxu0 }
 0x153   :  { %v1411_v25 = vadd.f32 %v1410_v60, %v1370_v23  ;;  %v1579_v26 = vmax.f32 %v1409_v22, 0.0 }
 0x154   :  { %v1372_v27 = vpop.f32.mrf.mxu0 }
 0x155   :  { %v1580_v28 = vmax.f32 %v1411_v25, 0.0  ;;  %v1583_v9 = vpack.c.bf16 %v1579_v26, %v1579_v26 }
 0x157   :  { %v1449_v29 = vpop.f32.mrf.mxu1  ;;  %v1584_v30 = vpack.c.bf16 %v1580_v28, %v1580_v28 }
 0x158   :  { %v1450_v52 = vadd.f32 %v1449_v29, %v258_v34 }
 0x159   :  { %v1451_v16 = vpop.f32.mrf.mxu1  ;;  %1882 = vmatprep.mubr.bf16.mxu0 %v1584_v30 }
 0x15a   :  { %1883 = vmatmul.mubr.bf16.vlgmr.msra.gmra.mxu0 %v1583_v9  ;;  %v1452_v40 = vadd.f32 %v1451_v16, %v262_v37 }
 0x15b   :  { %v1453_v31 = vpop.f32.mrf.mxu1 }
 0x15d   :  { %v1454_v20 = vpop.f32.mrf.mxu1 }
 0x18e   :  { %v1490_v33 = vpop.f32.mrf.mxu0 }
 0x18f   :  { %v1491_v41 = vadd.f32 %v1490_v33, %v1450_v52 }
 0x190   :  { %v1492_v35 = vpop.f32.mrf.mxu0 }
 0x191   :  { %v1493_v43 = vadd.f32 %v1492_v35, %v1452_v40 }
 0x192   :  { %v1494_v38 = vpop.f32.mrf.mxu0 }
 0x194   :  { %v1495_v39 = vpop.f32.mrf.mxu0 }
 0x196   :  { %v1572_v8 = vpop.f32.mrf.mxu0 }
 0x197   :  { %v1531_v42 = vpop.f32.mrf.mxu1 }
 0x198   :  { %v1532_v44 = vadd.f32 %v1531_v42, %v1491_v41  ;;  %v1574_v46 = vpop.f32.mrf.mxu0 }
 0x199   :  { %v1533_v45 = vpop.f32.mrf.mxu1 }
 0x19a   :  { %v1573_v36 = vadd.f32 %v1572_v8, %v1532_v44  ;;  %v1534_v47 = vadd.f32 %v1533_v45, %v1493_v43  ;;  %v1576_v49 = vpop.f32.mrf.mxu0 }
 0x19b   :  { %v1535_v48 = vpop.f32.mrf.mxu1 }
 0x19c   :  { %v1575_v50 = vadd.f32 %v1574_v46, %v1534_v47  ;;  %v1581_v51 = vmax.f32 %v1573_v36, 0.0  ;;  %v1577_v54 = vpop.f32.mrf.mxu0 }
 0x19d   :  { %v1536_v53 = vpop.f32.mrf.mxu1 }
 0x19e   :  { %v1582_v55 = vmax.f32 %v1575_v50, 0.0  ;;  %v1585_v57 = vpack.c.bf16 %v1581_v51, %v1581_v51 }
 0x1a0   :  { %v1586_v56 = vpack.c.bf16 %v1582_v55, %v1582_v55 }
 0x1a2   :  { %1922 = vmatprep.mubr.bf16.mxu1 %v1586_v56 }
 0x1a3   :  { %1923 = vmatmul.mubr.bf16.vlgmr.msra.gmra.mxu1 %v1585_v57 }
 0x21a   :  { %v2184_v58 = vpop.f32.mrf.mxu0 }
 0x21c   :  { %v2185_v59 = vpop.f32.mrf.mxu0 }
 0x21d   :  { %v2186_v60 = vadd.f32 %v2185_v59, %v2184_v58 }
 0x21e   :  { %v2187_v61 = vpop.f32.mrf.mxu0 }
 0x21f   :  { %v1885_v2 = vadd.f32 %v2186_v60, %v2135_v63 }
 0x220   :  { %v2188_v62 = vpop.f32.mrf.mxu0 }
 0x263   :  { %v2206_v0 = vpop.f32.mrf.mxu1 }
 0x265   :  { %v2207_v1 = vpop.f32.mrf.mxu1 }
 0x266   :  { %v2208_v3 = vadd.f32 %v2207_v1, %v2206_v0 }
 0x267   :  { %v2209_v4 = vpop.f32.mrf.mxu1 }
 0x268   :  { %v1925_v5 = vadd.f32 %v2208_v3, %v1885_v2 }
 0x269   :  { %v2210_v6 = vpop.f32.mrf.mxu1 }
 0x26a   :  { %v1930_v7 = vpack.c.bf16 %v1925_v5, %v1925_v5 }
 0x26c   :  { %1931 = vst [vmem:[%s2764_s5] sm:$0xf] %v1930_v7 }
 0x26d   :  { %1936 = vsyncpa [#allocation3], 1 }

</bundles_post_ra>
